<compile_context>
chip_gen: v7x
topology: tpu7x:2x2x1
jax: 0.10.0
libtpu: 0.0.40
codegen_flags: <defaults>
</compile_context>

<pallas_src>
import functools

import jax
import jax.numpy as jnp
from jax.experimental import pallas as pl
from jax.experimental.pallas import tpu as pltpu


def _cdiv(a, b):
    return -(-a // b)


def _round_up(a, b):
    return _cdiv(a, b) * b


def _pick_tile_n(n_lanes, c, itemsize, budget_bytes=16 * 1024 * 1024, cap=8192):
    """128-multiple spatial tile: double-buffered inputs fit `budget_bytes`, and the
    tail tile is balanced (never ~all padding)."""
    per_lane = 2 * (c * itemsize + 4)          # 2x-buffered logits stream + int32 labels
    tn_cap = (budget_bytes // per_lane) // 128 * 128
    tn_cap = max(128, min(int(tn_cap), int(cap)))
    tn_cap = min(tn_cap, max(128, (n_lanes // 128) * 128))
    n_tiles = _cdiv(n_lanes, tn_cap)
    return _round_up(_cdiv(n_lanes, n_tiles), 128)


def _pick_chunk(tile_n, c):
    """Largest 128-multiple chunk dividing TN with (C_pad, chunk) f32 <= ~8 vregs."""
    c_pad = _round_up(max(c, 1), 8)
    for cand in (512, 256, 128):
        if tile_n % cand == 0 and c_pad * cand <= 4096:
            return cand
    return 128


def _accumulate(x_ref, t_ref, acc_ref, *, g, chunk, n_chunks, tile_n, n_total, masked):
    """Stream one (C, TN) tile through `chunk`-lane in-register slabs and add the
    lane-dense (C, 128) partial sums into the resident accumulator block."""
    C = x_ref.shape[0]
    cls_ids = jax.lax.broadcasted_iota(jnp.int32, (C, chunk), 0)

    inter_acc = jnp.zeros((C, 128), jnp.float32)
    ssum_acc = jnp.zeros((C, 128), jnp.float32)
    cnt_acc = jnp.zeros((C, 128), jnp.float32)

    for ci in range(n_chunks):
        off = ci * chunk
        xs = x_ref[:, pl.ds(off, chunk)].astype(jnp.float32)        # (C, chunk)

        # Channel softmax == log_softmax(dim=1).exp(); exp goes to the EUP.
        m = jnp.max(xs, axis=0, keepdims=True)                      # (1, chunk)
        e = jnp.exp(xs - m)
        p = e * (1.0 / jnp.sum(e, axis=0, keepdims=True))           # exact reciprocal

        labels = t_ref[:, pl.ds(off, chunk)]                        # (1, chunk) int32
        hit = cls_ids == labels                                     # (C, chunk) bool

        if masked:
            # Ragged tail / phantom split tiles only (gated by pl.when in caller).
            lane = jax.lax.broadcasted_iota(jnp.int32, (1, chunk), 1)
            valid = (g * tile_n + off + lane) < n_total             # (1, chunk)
            p = jnp.where(valid, p, 0.0)        # mask p itself: garbage lanes -> 0
            hit = jnp.logical_and(hit, valid)

        inter_c = jnp.where(hit, p, 0.0)                            # p * onehot, no mul
        cnt_c = jnp.where(hit, 1.0, 0.0)                            # onehot

        # Fold the chunk's lanes into aligned 128-lane register accumulators.
        for k in range(chunk // 128):
            sl = slice(k * 128, (k + 1) * 128)
            inter_acc = inter_acc + inter_c[:, sl]
            ssum_acc = ssum_acc + p[:, sl]
            cnt_acc = cnt_acc + cnt_c[:, sl]

    acc_ref[0] += inter_acc
    acc_ref[1] += ssum_acc
    acc_ref[2] += cnt_acc


def _miou_accum_kernel(x_ref, t_ref, acc_ref, *, n_total, tile_n, chunk,
                       tiles_per_split, n_full_tiles, any_masked):
    n = pl.program_id(2)
    g = pl.program_id(0) * tiles_per_split + n      # global spatial tile index

    @pl.when(n == 0)
    def _():
        acc_ref[...] = jnp.zeros_like(acc_ref)

    body = functools.partial(
        _accumulate, x_ref, t_ref, acc_ref, g=g, chunk=chunk,
        n_chunks=tile_n // chunk, tile_n=tile_n, n_total=n_total)

    if not any_masked:
        body(masked=False)
    elif n_full_tiles == 0:
        body(masked=True)
    else:
        @pl.when(g < n_full_tiles)
        def _():
            body(masked=False)

        @pl.when(g >= n_full_tiles)
        def _():
            body(masked=True)


@functools.partial(jax.jit, static_argnames=("eps", "tile_n_cap"))
def miou_loss2(logits, target, eps=1e-7, tile_n_cap=8192):
    """JAX/Pallas equivalent of mIoULoss2.forward(logits, target)."""
    B, C, H, W = logits.shape
    N = H * W
    x = logits.reshape(B, C, N)                     # keep caller dtype (bf16 ok)
    t = target.reshape(B, 1, N).astype(jnp.int32)

    if N < 128:
        # Tiny spatial extent: pad the lane axis up to one full 128-lane tile.
        x = jnp.pad(x, ((0, 0), (0, 0), (0, 128 - N)))
        t = jnp.pad(t, ((0, 0), (0, 0), (0, 128 - N)))
    n_lanes = max(N, 128)

    TN = _pick_tile_n(n_lanes, C, x.dtype.itemsize, cap=tile_n_cap)
    chunk = _pick_chunk(TN, C)
    n_tiles = _cdiv(n_lanes, TN)
    n_full_tiles = N // TN                          # tiles with no invalid lanes

    # 2-way spatial split when per-batch parallelism alone can't occupy both v7x TCs.
    n_split = 2 if (B % 2 == 1 and n_tiles >= 2) else 1
    tiles_per_split = _cdiv(n_tiles, n_split)
    any_masked = (n_split * tiles_per_split * TN) > N

    if n_split * tiles_per_split > n_tiles:
        # Phantom padding tiles exist: clamp the DMA block index, mask in-kernel.
        def sp_idx(s, b, n):
            return jnp.minimum(s * tiles_per_split + n, n_tiles - 1)
    else:
        def sp_idx(s, b, n):
            return s * tiles_per_split + n

    kernel = functools.partial(
        _miou_accum_kernel, n_total=N, tile_n=TN, chunk=chunk,
        tiles_per_split=tiles_per_split, n_full_tiles=n_full_tiles,
        any_masked=any_masked)

    acc = pl.pallas_call(
        kernel,
        out_shape=jax.ShapeDtypeStruct((n_split, B, 3, C, 128), jnp.float32),
        grid_spec=pltpu.PrefetchScalarGridSpec(
            num_scalar_prefetch=0,
            grid=(n_split, B, tiles_per_split),
            in_specs=[
                pl.BlockSpec((None, C, TN), lambda s, b, n: (b, 0, sp_idx(s, b, n))),
                pl.BlockSpec((None, 1, TN), lambda s, b, n: (b, 0, sp_idx(s, b, n))),
            ],
            # Fused (inter, softmax-sum, count) accumulator: one resident block,
            # one writeback DMA per (split, batch).
            out_specs=pl.BlockSpec((None, None, 3, C, 128),
                                   lambda s, b, n: (s, b, 0, 0, 0)),
        ),
        compiler_params=pltpu.CompilerParams(
            # split & batch axes are independent -> megacore sharding on v7x;
            # the spatial axis is the running reduction.
            dimension_semantics=("parallel", "parallel", "arbitrary"),
            # Chunked body keeps temporaries in vregs; inputs (<=16 MiB double-
            # buffered) are the only big VMEM consumer.  Safe under v7x's 64 MiB.
            vmem_limit_bytes=32 * 1024 * 1024,
        ),
    )(x, t)

    # Tiny (C,)-sized epilogue in plain JAX.
    intersection = jnp.sum(acc[:, :, 0], axis=(0, 1, 3))            # (C,)
    softmax_sum = jnp.sum(acc[:, :, 1], axis=(0, 1, 3))             # (C,)
    count = jnp.sum(acc[:, :, 2], axis=(0, 1, 3))                   # (C,)
    union = (softmax_sum + count) - intersection
    jaccard = intersection / jnp.maximum(union, eps)                # smooth = 0.0
    loss = (1.0 - jaccard) * (count > 0).astype(jnp.float32)
    return jnp.mean(loss)


def _miou_loss2_ref(logits, target, eps=1e-7):
    """Pure-JAX reference mirroring the PyTorch forward, for validation."""
    B, C, H, W = logits.shape
    p = jax.nn.softmax(logits.reshape(B, C, -1).astype(jnp.float32), axis=1)
    oh = jax.nn.one_hot(target.reshape(B, -1), C, axis=-1)          # (B, N, C)
    oh = jnp.transpose(oh, (0, 2, 1)).astype(p.dtype)               # (B, C, N)
    inter = jnp.sum(p * oh, axis=(0, 2))
    card = jnp.sum(p + oh, axis=(0, 2))
    union = card - inter
    jac = inter / jnp.maximum(union, eps)
    loss = (1.0 - jac) * (jnp.sum(oh, axis=(0, 2)) > 0).astype(p.dtype)
    return jnp.mean(loss)


if __name__ == "__main__":
    key = jax.random.PRNGKey(0)
    k = jax.random.split(key, 8)

    # Case 1: lane-aligned spatial size, even batch -> unmasked fast path only.
    B, C, H, W = 2, 4, 16, 16
    logits = jax.random.normal(k[0], (B, C, H, W), dtype=jnp.float32)
    target = jax.random.randint(k[1], (B, H, W), 0, C, dtype=jnp.int32)
    loss = miou_loss2(logits, target)
    jax.block_until_ready(loss)
    ref = _miou_loss2_ref(logits, target)
    assert jnp.allclose(loss, ref, rtol=1e-4, atol=1e-5), (loss, ref)

    # Case 2: module-default n_classes=12, ragged spatial size -> gated tail mask.
    B2, C2, H2, W2 = 2, 12, 10, 13
    logits2 = jax.random.normal(k[2], (B2, C2, H2, W2), dtype=jnp.float32)
    target2 = jax.random.randint(k[3], (B2, H2, W2), 0, C2, dtype=jnp.int32)
    loss2 = miou_loss2(logits2, target2)
    jax.block_until_ready(loss2)
    ref2 = _miou_loss2_ref(logits2, target2)
    assert jnp.allclose(loss2, ref2, rtol=1e-4, atol=1e-5), (loss2, ref2)

    # Case 3: B=1 with a forced small tile cap -> exercises the 2-way spatial split
    # (v7x megacore path), the phantom-tile index clamp, and the ragged mask.
    B3, C3, H3, W3 = 1, 5, 18, 20
    logits3 = jax.random.normal(k[4], (B3, C3, H3, W3), dtype=jnp.float32)
    target3 = jax.random.randint(k[5], (B3, H3, W3), 0, C3, dtype=jnp.int32)
    loss3 = miou_loss2(logits3, target3, tile_n_cap=128)
    jax.block_until_ready(loss3)
    ref3 = _miou_loss2_ref(logits3, target3)
    assert jnp.allclose(loss3, ref3, rtol=1e-4, atol=1e-5), (loss3, ref3)

    # Case 4: bf16 logits pass straight through (halves HBM traffic on v5e/v6e);
    # the kernel upcasts per chunk, so parity with the f32 reference is kept.
    logits4 = jax.random.normal(k[6], (2, 4, 16, 16), dtype=jnp.bfloat16)
    target4 = jax.random.randint(k[7], (2, 16, 16), 0, 4, dtype=jnp.int32)
    loss4 = miou_loss2(logits4, target4)
    jax.block_until_ready(loss4)
    ref4 = _miou_loss2_ref(logits4, target4)
    assert jnp.allclose(loss4, ref4, rtol=1e-4, atol=1e-5), (loss4, ref4)

    print("KERNEL_OK")
</pallas_src>

<mosaic_0001>
module attributes {stable_mosaic.version = 11 : i64} {
  func.func @_miou_accum_kernel(%arg0: i32, %arg1: i32, %arg2: i32, %arg3: memref<1x4x256xf32, #tpu.memory_space<vmem>>, %arg4: memref<1x1x256xi32, #tpu.memory_space<vmem>>, %arg5: memref<1x1x3x4x128xf32, #tpu.memory_space<vmem>>) attributes {dimension_semantics = [#tpu.dimension_semantics<parallel>, #tpu.dimension_semantics<parallel>, #tpu.dimension_semantics<arbitrary>], iteration_bounds = array<i64: 1, 2, 1>, scalar_prefetch = 0 : i64, scratch_operands = 0 : i64, tpu.core_type = #tpu.core_type<tc>, window_params = [{transform_indices = @transform_0, window_bounds = array<i64: 1, 4, 256>}, {transform_indices = @transform_1, window_bounds = array<i64: 1, 1, 256>}, {transform_indices = @transform_2, window_bounds = array<i64: 1, 1, 3, 4, 128>}]} {
    %c0_i32 = arith.constant 0 : i32
    %0 = arith.cmpi eq, %arg2, %c0_i32 : i32
    %1 = arith.extui %0 : i1 to i32
    %c0_i32_0 = arith.constant 0 : i32
    %2 = arith.cmpi ne, %1, %c0_i32_0 : i32
    scf.if %2 {
      %cst_42 = arith.constant 0.000000e+00 : f32
      %59 = vector.broadcast %cst_42 : f32 to vector<3x4x128xf32>
      %c0_43 = arith.constant 0 : index
      %c0_44 = arith.constant 0 : index
      %c0_45 = arith.constant 0 : index
      %c0_46 = arith.constant 0 : index
      %c0_47 = arith.constant 0 : index
      %60 = vector.load %arg5[%c0_43, %c0_44, %c0_45, %c0_46, %c0_47] : memref<1x1x3x4x128xf32, #tpu.memory_space<vmem>>, vector<1x1x3x4x128xf32>
      %61 = vector.shape_cast %60 : vector<1x1x3x4x128xf32> to vector<3x4x128xf32>
      %62 = vector.shape_cast %59 : vector<3x4x128xf32> to vector<1x1x3x4x128xf32>
      tpu.vector_store %arg5[%c0_43, %c0_44, %c0_45, %c0_46, %c0_47], %62 {strides = array<i32>} : memref<1x1x3x4x128xf32, #tpu.memory_space<vmem>>, vector<1x1x3x4x128xf32>,
    } else {
    }
    %3 = tpu.iota {dimensions = array<i32: 0>} : vector<4x256xi32>
    %cst = arith.constant 0.000000e+00 : f32
    %4 = vector.broadcast %cst : f32 to vector<4x128xf32>
    %cst_1 = arith.constant 0.000000e+00 : f32
    %5 = vector.broadcast %cst_1 : f32 to vector<4x128xf32>
    %cst_2 = arith.constant 0.000000e+00 : f32
    %6 = vector.broadcast %cst_2 : f32 to vector<4x128xf32>
    %c0 = arith.constant 0 : index
    %c0_3 = arith.constant 0 : index
    %c0_4 = arith.constant 0 : index
    %7 = vector.load %arg3[%c0, %c0_3, %c0_4] : memref<1x4x256xf32, #tpu.memory_space<vmem>>, vector<1x4x256xf32>
    %8 = vector.shape_cast %7 : vector<1x4x256xf32> to vector<4x256xf32>
    %cst_5 = arith.constant dense<0xFF800000> : vector<256xf32>
    %9 = vector.multi_reduction <maximumf>, %8, %cst_5 [0] : vector<4x256xf32> to vector<256xf32>
    %10 = vector.shape_cast %9 : vector<256xf32> to vector<1x256xf32>
    %11 = vector.broadcast %10 : vector<1x256xf32> to vector<4x256xf32>
    %12 = arith.subf %8, %11 : vector<4x256xf32>
    %13 = math.exp %12 : vector<4x256xf32>
    %cst_6 = arith.constant dense<0.000000e+00> : vector<256xf32>
    %14 = vector.multi_reduction <add>, %13, %cst_6 [0] : vector<4x256xf32> to vector<256xf32>
    %15 = vector.shape_cast %14 : vector<256xf32> to vector<1x256xf32>
    %cst_7 = arith.constant 1.000000e+00 : f32
    %16 = vector.broadcast %cst_7 : f32 to vector<1x256xf32>
    %17 = arith.divf %16, %15 : vector<1x256xf32>
    %18 = vector.broadcast %17 : vector<1x256xf32> to vector<4x256xf32>
    %19 = arith.mulf %13, %18 : vector<4x256xf32>
    %c0_8 = arith.constant 0 : index
    %c0_9 = arith.constant 0 : index
    %c0_10 = arith.constant 0 : index
    %20 = vector.load %arg4[%c0_8, %c0_9, %c0_10] : memref<1x1x256xi32, #tpu.memory_space<vmem>>, vector<1x1x256xi32>
    %21 = vector.shape_cast %20 : vector<1x1x256xi32> to vector<1x256xi32>
    %22 = vector.broadcast %21 : vector<1x256xi32> to vector<4x256xi32>
    %23 = arith.cmpi eq, %3, %22 : vector<4x256xi32>
    %cst_11 = arith.constant 0.000000e+00 : f32
    %24 = vector.broadcast %cst_11 : f32 to vector<4x256xf32>
    %25 = arith.select %23, %19, %24 : vector<4x256xi1>, vector<4x256xf32>
    %cst_12 = arith.constant 1.000000e+00 : f32
    %cst_13 = arith.constant 0.000000e+00 : f32
    %26 = vector.broadcast %cst_12 : f32 to vector<4x256xf32>
    %27 = vector.broadcast %cst_13 : f32 to vector<4x256xf32>
    %28 = arith.select %23, %26, %27 : vector<4x256xi1>, vector<4x256xf32>
    %29 = vector.extract_strided_slice %25 {offsets = [0, 0], sizes = [4, 128], strides = [1, 1]} : vector<4x256xf32> to vector<4x128xf32>
    %30 = arith.addf %4, %29 : vector<4x128xf32>
    %31 = vector.extract_strided_slice %19 {offsets = [0, 0], sizes = [4, 128], strides = [1, 1]} : vector<4x256xf32> to vector<4x128xf32>
    %32 = arith.addf %5, %31 : vector<4x128xf32>
    %33 = vector.extract_strided_slice %28 {offsets = [0, 0], sizes = [4, 128], strides = [1, 1]} : vector<4x256xf32> to vector<4x128xf32>
    %34 = arith.addf %6, %33 : vector<4x128xf32>
    %35 = vector.extract_strided_slice %25 {offsets = [0, 128], sizes = [4, 128], strides = [1, 1]} : vector<4x256xf32> to vector<4x128xf32>
    %36 = arith.addf %30, %35 : vector<4x128xf32>
    %37 = vector.extract_strided_slice %19 {offsets = [0, 128], sizes = [4, 128], strides = [1, 1]} : vector<4x256xf32> to vector<4x128xf32>
    %38 = arith.addf %32, %37 : vector<4x128xf32>
    %39 = vector.extract_strided_slice %28 {offsets = [0, 128], sizes = [4, 128], strides = [1, 1]} : vector<4x256xf32> to vector<4x128xf32>
    %40 = arith.addf %34, %39 : vector<4x128xf32>
    %c0_14 = arith.constant 0 : index
    %c0_15 = arith.constant 0 : index
    %c0_16 = arith.constant 0 : index
    %c0_17 = arith.constant 0 : index
    %c0_18 = arith.constant 0 : index
    %41 = vector.load %arg5[%c0_14, %c0_15, %c0_16, %c0_17, %c0_18] : memref<1x1x3x4x128xf32, #tpu.memory_space<vmem>>, vector<1x1x1x4x128xf32>
    %42 = vector.shape_cast %41 : vector<1x1x1x4x128xf32> to vector<4x128xf32>
    %43 = arith.addf %42, %36 : vector<4x128xf32>
    %c0_19 = arith.constant 0 : index
    %c0_20 = arith.constant 0 : index
    %c0_21 = arith.constant 0 : index
    %c0_22 = arith.constant 0 : index
    %c0_23 = arith.constant 0 : index
    %44 = vector.load %arg5[%c0_19, %c0_20, %c0_21, %c0_22, %c0_23] : memref<1x1x3x4x128xf32, #tpu.memory_space<vmem>>, vector<1x1x1x4x128xf32>
    %45 = vector.shape_cast %44 : vector<1x1x1x4x128xf32> to vector<4x128xf32>
    %46 = vector.shape_cast %43 : vector<4x128xf32> to vector<1x1x1x4x128xf32>
    tpu.vector_store %arg5[%c0_19, %c0_20, %c0_21, %c0_22, %c0_23], %46 {strides = array<i32>} : memref<1x1x3x4x128xf32, #tpu.memory_space<vmem>>, vector<1x1x1x4x128xf32>,
    %c0_24 = arith.constant 0 : index
    %c0_25 = arith.constant 0 : index
    %c1 = arith.constant 1 : index
    %c0_26 = arith.constant 0 : index
    %c0_27 = arith.constant 0 : index
    %47 = vector.load %arg5[%c0_24, %c0_25, %c1, %c0_26, %c0_27] : memref<1x1x3x4x128xf32, #tpu.memory_space<vmem>>, vector<1x1x1x4x128xf32>
    %48 = vector.shape_cast %47 : vector<1x1x1x4x128xf32> to vector<4x128xf32>
    %49 = arith.addf %48, %38 : vector<4x128xf32>
    %c0_28 = arith.constant 0 : index
    %c0_29 = arith.constant 0 : index
    %c1_30 = arith.constant 1 : index
    %c0_31 = arith.constant 0 : index
    %c0_32 = arith.constant 0 : index
    %50 = vector.load %arg5[%c0_28, %c0_29, %c1_30, %c0_31, %c0_32] : memref<1x1x3x4x128xf32, #tpu.memory_space<vmem>>, vector<1x1x1x4x128xf32>
    %51 = vector.shape_cast %50 : vector<1x1x1x4x128xf32> to vector<4x128xf32>
    %52 = vector.shape_cast %49 : vector<4x128xf32> to vector<1x1x1x4x128xf32>
    tpu.vector_store %arg5[%c0_28, %c0_29, %c1_30, %c0_31, %c0_32], %52 {strides = array<i32>} : memref<1x1x3x4x128xf32, #tpu.memory_space<vmem>>, vector<1x1x1x4x128xf32>,
    %c0_33 = arith.constant 0 : index
    %c0_34 = arith.constant 0 : index
    %c2 = arith.constant 2 : index
    %c0_35 = arith.constant 0 : index
    %c0_36 = arith.constant 0 : index
    %53 = vector.load %arg5[%c0_33, %c0_34, %c2, %c0_35, %c0_36] : memref<1x1x3x4x128xf32, #tpu.memory_space<vmem>>, vector<1x1x1x4x128xf32>
    %54 = vector.shape_cast %53 : vector<1x1x1x4x128xf32> to vector<4x128xf32>
    %55 = arith.addf %54, %40 : vector<4x128xf32>
    %c0_37 = arith.constant 0 : index
    %c0_38 = arith.constant 0 : index
    %c2_39 = arith.constant 2 : index
    %c0_40 = arith.constant 0 : index
    %c0_41 = arith.constant 0 : index
    %56 = vector.load %arg5[%c0_37, %c0_38, %c2_39, %c0_40, %c0_41] : memref<1x1x3x4x128xf32, #tpu.memory_space<vmem>>, vector<1x1x1x4x128xf32>
    %57 = vector.shape_cast %56 : vector<1x1x1x4x128xf32> to vector<4x128xf32>
    %58 = vector.shape_cast %55 : vector<4x128xf32> to vector<1x1x1x4x128xf32>
    tpu.vector_store %arg5[%c0_37, %c0_38, %c2_39, %c0_40, %c0_41], %58 {strides = array<i32>} : memref<1x1x3x4x128xf32, #tpu.memory_space<vmem>>, vector<1x1x1x4x128xf32>,
    return
  }
  func.func @transform_0(%arg0: i32, %arg1: i32, %arg2: i32) -> (i32, i32, i32) {
    %c1_i32 = arith.constant 1 : i32
    %0 = arith.muli %arg0, %c1_i32 : i32
    %1 = arith.addi %0, %arg2 : i32
    %c0_i32 = arith.constant 0 : i32
    %c0_i32_0 = arith.constant 0 : i32
    return %arg1, %c0_i32, %1 : i32, i32, i32
  }
  func.func @transform_1(%arg0: i32, %arg1: i32, %arg2: i32) -> (i32, i32, i32) {
    %c1_i32 = arith.constant 1 : i32
    %0 = arith.muli %arg0, %c1_i32 : i32
    %1 = arith.addi %0, %arg2 : i32
    %c0_i32 = arith.constant 0 : i32
    %c0_i32_0 = arith.constant 0 : i32
    return %arg1, %c0_i32, %1 : i32, i32, i32
  }
  func.func @transform_2(%arg0: i32, %arg1: i32, %arg2: i32) -> (i32, i32, i32, i32, i32) {
    %c0_i32 = arith.constant 0 : i32
    %c0_i32_0 = arith.constant 0 : i32
    %c0_i32_1 = arith.constant 0 : i32
    %c0_i32_2 = arith.constant 0 : i32
    return %arg0, %arg1, %c0_i32, %c0_i32_0, %c0_i32_1 : i32, i32, i32, i32, i32
  }
}

</mosaic_0001>

<bundles_post_ra>
// kernel: miou_loss2.1
= control target key start
LH: loop header
LB: loop body
LE: loop exit
PB: predicated region body
PF: predicated region fallthrough
CT: control target
= control target key end

     0   :  { %s530_s9 = smov 0   ;;  %s532_s10 = smov 0   ;;  %s595_s0 = inlined_call_operand.vmem [shape: f32[2,4,256], index: 0, kind: input, shape index: {}]   ;;  %s596_s1 = inlined_call_operand.vmem [shape: s32[2,1,256], index: 1, kind: input, shape index: {}]   ;;  %s597_s2 = inlined_call_operand.vmem [shape: f32[1,2,3,4,128], index: 2, kind: output, shape index: {}]  }
   0x1   :  { %s534_s11 = smov 0  }
   0x2 LB: > { %s27_s12 = sadd.s32 1, %s508_s10  ;;  %p445_p0 = scmp.ge.s32.totalorder %s512_s11, 1  ;;  %s512_s11 = sphi %s534_s11, %s12_s11   ;;  %s508_s10 = sphi %s532_s10, %s599_s10   ;;  %s504_s9 = sphi %s530_s9, %s598_s9  }
   0x3   : > { %p29_p1 = scmp.ge.s32.totalorder %s27_s12, 2  ;;  %p164_p2 = scmp.lt.s32.totalorder %s512_s11, 3 }
   0x5   : > { %s601_s12 = smov (%p29_p1, %s27_s12), 0  ;;  %p165_p3 = pnand %p445_p0, %p164_p2 }
   0x6   : > { %p206_p4 = scmp.lt.s32.totalorder (!%p165_p3), %s504_s9, 1  ;;  %v243_v0 = vlaneseq (!%p165_p3)  ;;  %vm249_vm0 = vcmask (!%p165_p3), 1043456   ;;  %v514_v5 = vmov (!%p165_p3), 0.0  }
   0x7   : > { %168 = sbr.rel (%p165_p3) target bundleno = 88 (0x58), region = 28 }
   0x8   : > { %v548_v1 = vshrl.u32 (!%p165_p3), %v243_v0, 7 }
   0xa   : > { %v300_v2 = vsub.s32 (!%p165_p3), 0, %v548_v1  ;;  %v304_v3 = vsub.s32 (!%p165_p3), 1, %v548_v1 }
   0xe   : > { %s603_s9 = smov (!%p206_p4, %s504_s9), 1 }
   0xf   : > { %s456_s13 = sshll.u32 %s603_s9, 3  ;;  %s457_s14 = smul.u32 12, %s603_s9 }
  0x10   : > { %s213_s17 = scalar_lea.vmem %s595_s0, %s456_s13  ;;  %s448_s18 = sshll.u32 %s603_s9, 1 }
  0x11   : > { %s558_s21 = scalar_lea.vmem %s597_s2, %s457_s14  ;;  %v245_v4 = vld [vmem:[%s213_s17] sm:$0xff]  ;;  %s224_s24 = scalar_lea.vmem %s596_s1, %s448_s18 }
  0x12   : > { %240 = vst [vmem:[%s558_s21] sm:$0xf] %v514_v5  ;;  %v247_v6 = vcombine.high %v245_v4, %v245_v4  ;;  %v250_v7 = vsel %vm249_vm0, %v245_v4, -inf  ;;  %241 = vst [vmem:[%s558_s21 + $0x4] sm:$0xf] %v514_v5  ;;  %v297_v8 = vld [vmem:[%s224_s24] sm:$0x3] }
  0x13   : > { %242 = vst [vmem:[%s558_s21 + $0x8] sm:$0xf] %v514_v5  ;;  %v251_v9 = vrot.slane %v250_v7, 4  ;;  %v301_v10 = vrot.slane %v297_v8, %v300_v2  ;;  %v305_v11 = vrot.slane %v297_v8, %v304_v3 }
  0x14   : > { %v257_v12 = vsel %vm249_vm0, %v247_v6, -inf }
  0x15   : > { %v252_v13 = vmax.f32 %v250_v7, %v251_v9  ;;  %v258_v14 = vrot.slane %v257_v12, 4  ;;  %vm306_vm1 = vcmp.eq.s32.totalorder %v548_v1, %v301_v10  ;;  %vm307_vm2 = vcmp.eq.s32.totalorder %v548_v1, %v305_v11 }
  0x16   : > { %v313_v15 = vsel %vm306_vm1, 1.0, %v514_v5  ;;  %v314_v16 = vsel %vm307_vm2, 1.0, %v514_v5 }
  0x17   : > { %v253_v17 = vrot.slane %v252_v13, 2  ;;  %v259_v18 = vmax.f32 %v257_v12, %v258_v14  ;;  %v322_v19 = vadd.f32 %v314_v16, %v313_v15 }
  0x19   : > { %v254_v20 = vmax.f32 %v252_v13, %v253_v17  ;;  %v260_v21 = vrot.slane %v259_v18, 2  ;;  %v450_v55 = vld [vmem:[%s558_s21 + $0x4] sm:$0xf]  ;;  %v323_v57 = vld [vmem:[%s558_s21] sm:$0xf] }
  0x1a   : > { %v452_v22 = vld [vmem:[%s558_s21 + $0x8] sm:$0xf] }
  0x1b   : > { %v255_v23 = vrot.slane %v254_v20, 1  ;;  %v261_v24 = vmax.f32 %v259_v18, %v260_v21  ;;  %v332_v25 = vadd.f32 %v452_v22, %v322_v19 }
  0x1d   : > { %v256_v26 = vmax.f32 %v254_v20, %v255_v23  ;;  %v262_v27 = vrot.slane %v261_v24, 1  ;;  %453 = vst [vmem:[%s558_s21 + $0x8] sm:$0xf] %v332_v25 }
  0x1f   : > { %v263_v28 = vmax.f32 %v261_v24, %v262_v27 }
  0x21   : > { %v266_v29 = vcombine.low %v256_v26, %v263_v28 }
  0x23   : > { %v268_v30 = vsub.f32 %v245_v4, %v266_v29 }
  0x25   : > { %v269_v31 = vmul.f32 1.442695, %v268_v30 }
  0x27   : > { %484 = vpow2.f32 %v269_v31 }
  0x31   : > { %v485_v32 = vpop.eup %484 }
  0x32   : > { %v272_v33 = vcombine.high %v485_v32, %v485_v32  ;;  %v274_v34 = vsel %vm249_vm0, %v485_v32, 0.0 }
  0x33   : > { %v275_v35 = vrot.slane %v274_v34, 4 }
  0x34   : > { %v281_v36 = vsel %vm249_vm0, %v272_v33, 0.0 }
  0x35   : > { %v276_v37 = vadd.f32 %v275_v35, %v274_v34  ;;  %v282_v38 = vrot.slane %v281_v36, 4 }
  0x37   : > { %v277_v39 = vrot.slane %v276_v37, 2  ;;  %v283_v40 = vadd.f32 %v282_v38, %v281_v36 }
  0x39   : > { %v278_v41 = vadd.f32 %v277_v39, %v276_v37  ;;  %v284_v42 = vrot.slane %v283_v40, 2 }
  0x3b   : > { %v279_v43 = vrot.slane %v278_v41, 1  ;;  %v285_v44 = vadd.f32 %v284_v42, %v283_v40 }
  0x3d   : > { %v280_v45 = vadd.f32 %v279_v43, %v278_v41  ;;  %v286_v46 = vrot.slane %v285_v44, 1 }
  0x3f   : > { %v287_v47 = vadd.f32 %v286_v46, %v285_v44  ;;  %486 = vrcp.f32 %v280_v45 }
  0x41   : > { %488 = vrcp.f32 %v287_v47 }
  0x49   : > { %v487_v48 = vpop.eup %486 }
  0x4b   : > { %v489_v49 = vpop.eup %488 }
  0x4c   : > { %v294_v50 = vcombine.low %v487_v48, %v489_v49 }
  0x4e   : > { %v296_v51 = vmul.f32 %v485_v32, %v294_v50 }
  0x50   : > { %v309_v52 = vcombine.high %v296_v51, %v296_v51  ;;  %v311_v53 = vsel %vm306_vm1, %v296_v51, 0.0  ;;  %v319_v54 = vrot.slane %v296_v51, 4 }
  0x52   : > { %v312_v56 = vsel %vm307_vm2, %v309_v52, 0.0  ;;  %v321_v58 = vadd.f32 %v319_v54, %v296_v51 }
  0x53   : > { %v318_v59 = vadd.f32 %v312_v56, %v311_v53 }
  0x54   : > { %v328_v60 = vadd.f32 %v450_v55, %v321_v58 }
  0x55   : > { %v324_v61 = vadd.f32 %v323_v57, %v318_v59 }
  0x56   : > { %451 = vst [vmem:[%s558_s21 + $0x4] sm:$0xf] %v328_v60 }
  0x57   : > { %325 = vst [vmem:[%s558_s21] sm:$0xf] %v324_v61 }
  0x58 PF: > { %s12_s11 = sadd.s32 1, %s512_s11   ;;  %s598_s9 = smov %s508_s10 }
  0x59   : > { %p9_p5 = scmp.ge.s32.totalorder %s12_s11, 4   ;;  %s599_s10 = smov %s601_s12 }
  0x5b   :  { %11 = sbr.rel (!%p9_p5) target bundleno = 2 (0x2), region = 67 }

</bundles_post_ra>
